<compile_context>
chip_gen: v6e
topology: v6e:2x2x1
jax: 0.10.0
libtpu: 0.0.40
codegen_flags: <defaults>
</compile_context>

<pallas_src>
import math
from functools import lru_cache, partial

import jax
import jax.numpy as jnp
from jax.experimental import pallas as pl
from jax.experimental.pallas import tpu as pltpu

HDIM = 96     # hidden_dim   (small)
CDIM = 64     # context_dim  (small)
CORR_LEVELS = 4
CORR_RADIUS = 3


def _round_up(x, m):
    return ((x + m - 1) // m) * m


def _pick_tile(M):
    for cand in (512, 256, 128):
        if M % cand == 0:
            return cand
    return 128


# ----------------------------------------------------------------------------
# Pallas kernels
# ----------------------------------------------------------------------------
def _mm_kernel_none(a_ref, b_ref, bias_ref, o_ref):
    acc = jnp.dot(a_ref[...], b_ref[...], preferred_element_type=jnp.float32)
    o_ref[...] = acc + bias_ref[...]


def _mm_kernel_relu(a_ref, b_ref, bias_ref, o_ref):
    acc = jnp.dot(a_ref[...], b_ref[...], preferred_element_type=jnp.float32)
    o_ref[...] = jnp.maximum(acc + bias_ref[...], 0.0)


def _mm_kernel_sigmoid(a_ref, b_ref, bias_ref, o_ref):
    acc = jnp.dot(a_ref[...], b_ref[...], preferred_element_type=jnp.float32)
    o_ref[...] = jax.nn.sigmoid(acc + bias_ref[...])


def _mm_kernel_tanh(a_ref, b_ref, bias_ref, o_ref):
    acc = jnp.dot(a_ref[...], b_ref[...], preferred_element_type=jnp.float32)
    o_ref[...] = jnp.tanh(acc + bias_ref[...])


_MM_KERNELS = {
    None: _mm_kernel_none,
    "relu": _mm_kernel_relu,
    "sigmoid": _mm_kernel_sigmoid,
    "tanh": _mm_kernel_tanh,
}


@lru_cache(maxsize=None)
def _build_matmul_call(M, K, Np, tm, activation):
    """bf16 x bf16 -> f32 matmul with fused bias + activation epilogue."""
    kernel = _MM_KERNELS[activation]
    return jax.jit(pl.pallas_call(
        kernel,
        out_shape=jax.ShapeDtypeStruct((M, Np), jnp.float32),
        grid=(M // tm,),
        in_specs=[
            pl.BlockSpec((tm, K), lambda i: (i, 0)),
            pl.BlockSpec((K, Np), lambda i: (0, 0)),     # weights stay resident
            pl.BlockSpec((1, Np), lambda i: (0, 0)),     # bias stays resident
        ],
        out_specs=pl.BlockSpec((tm, Np), lambda i: (i, 0)),
        compiler_params=pltpu.CompilerParams(
            dimension_semantics=("parallel",)),
    ))


def matmul_bias_act(a, w, bias, activation=None):
    """(M, K) @ (K, Nout) + bias, optional fused activation.  bf16 MXU, f32 acc."""
    M, K = a.shape
    K2, Nout = w.shape
    assert K == K2, (a.shape, w.shape)
    Np = max(128, _round_up(Nout, 128))          # lane-dense output stores
    if Np != Nout:
        w = jnp.pad(w, ((0, 0), (0, Np - Nout)))
        bias = jnp.pad(bias, (0, Np - Nout))
    Mp = _round_up(M, 128)
    a_b = a.astype(jnp.bfloat16)
    if Mp != M:                                   # never hit in this model
        a_b = jnp.pad(a_b, ((0, Mp - M), (0, 0)))
    tm = _pick_tile(Mp)
    out = _build_matmul_call(Mp, K, Np, tm, activation)(
        a_b, w.astype(jnp.bfloat16), bias.reshape(1, Np).astype(jnp.float32))
    if Mp != M or Np != Nout:
        out = out[:M, :Nout]
    return out


def _corr_kernel(a_ref, b_ref, o_ref, *, scale):
    o_ref[...] = jnp.dot(a_ref[...], b_ref[...],
                         preferred_element_type=jnp.float32) * scale


@lru_cache(maxsize=None)
def _build_corr_matmul(B, HW, D, tm, scale):
    return jax.jit(pl.pallas_call(
        partial(_corr_kernel, scale=scale),
        out_shape=jax.ShapeDtypeStruct((B, HW, HW), jnp.float32),
        grid=(B, HW // tm),
        in_specs=[
            pl.BlockSpec((None, tm, D), lambda b, i: (b, i, 0)),
            pl.BlockSpec((None, D, HW), lambda b, i: (b, 0, 0)),
        ],
        out_specs=pl.BlockSpec((None, tm, HW), lambda b, i: (b, i, 0)),
        compiler_params=pltpu.CompilerParams(
            dimension_semantics=("parallel", "parallel")),
    ))


def pallas_corr(f1, f2):
    """Batched f1 @ f2 with 1/sqrt(D) folded into the epilogue.
    f1: (B, HW, D), f2: (B, D, HW) -> (B, HW, HW) f32."""
    B, HW, D = f1.shape
    scale = float(1.0 / math.sqrt(D))
    tm = _pick_tile(HW) if HW % 128 == 0 else HW
    return _build_corr_matmul(B, HW, D, tm, scale)(
        f1.astype(jnp.bfloat16), f2.astype(jnp.bfloat16))


def _gru_combine_kernel(z_ref, q_ref, h_ref, o_ref):
    z = z_ref[...]
    o_ref[...] = (1.0 - z) * h_ref[...] + z * q_ref[...]


@lru_cache(maxsize=None)
def _build_gru_combine(M, C):
    return jax.jit(pl.pallas_call(
        _gru_combine_kernel,
        out_shape=jax.ShapeDtypeStruct((M, C), jnp.float32),
        grid=(1,),
        in_specs=[pl.BlockSpec((M, C), lambda i: (0, 0))] * 3,
        out_specs=pl.BlockSpec((M, C), lambda i: (0, 0)),
    ))


def pallas_gru_combine(z, q, h):
    """h' = (1 - z) * h + z * q  (z, q already sigmoid/tanh-activated)."""
    M, C = h.shape
    return _build_gru_combine(M, C)(z, q, h)


# ----------------------------------------------------------------------------
# Convolution = bf16 im2col (glue) + fused Pallas matmul (hot path).  NHWC.
# ----------------------------------------------------------------------------
# TODO(synk): the 3x3 im2col is still materialized in HBM (in bf16 to halve the
# traffic); a kh*kw reduction grid axis with a VMEM accumulator would remove it.
def _im2col_nhwc(x, kh, kw, stride, padding):
    N, H, W, C = x.shape
    if padding > 0:
        x = jnp.pad(x, ((0, 0), (padding, padding), (padding, padding), (0, 0)))
    Hp, Wp = H + 2 * padding, W + 2 * padding
    Hout = (Hp - kh) // stride + 1
    Wout = (Wp - kw) // stride + 1
    if kh == 1 and kw == 1:
        xs = x if stride == 1 else x[:, ::stride, ::stride, :]
        return xs.reshape(N * Hout * Wout, C), Hout, Wout
    patches = []
    for i in range(kh):
        for j in range(kw):
            patches.append(x[:, i:i + stride * (Hout - 1) + 1:stride,
                               j:j + stride * (Wout - 1) + 1:stride, :])
    # K index ordering = (i * kw + j) * C + c  (matches w.transpose(2,3,1,0))
    cols = jnp.concatenate(patches, axis=-1)
    return cols.reshape(N * Hout * Wout, kh * kw * C), Hout, Wout


def _weight_matrix(w):
    cout, cin, kh, kw = w.shape
    return w.transpose(2, 3, 1, 0).reshape(kh * kw * cin, cout)


def conv2d(x, params, stride=1, padding=0, activation=None):
    """NHWC conv; bias (+ optional relu/sigmoid/tanh) fused into the matmul."""
    w, b = params["w"], params["b"]
    cout, cin, kh, kw = w.shape
    N = x.shape[0]
    cols, Hout, Wout = _im2col_nhwc(x.astype(jnp.bfloat16), kh, kw, stride, padding)
    out = matmul_bias_act(cols, _weight_matrix(w), b, activation)
    return out.reshape(N, Hout, Wout, cout)


# ----------------------------------------------------------------------------
# Small helpers (glue)
# ----------------------------------------------------------------------------
def instance_norm(x, eps=1e-5):
    mean = x.mean(axis=(1, 2), keepdims=True)
    var = x.var(axis=(1, 2), keepdims=True)
    return (x - mean) * jax.lax.rsqrt(var + eps)


def avg_pool2(x):                                  # (B, 1, H, W) pyramid layout
    B, C, H, W = x.shape
    return x.reshape(B, C, H // 2, 2, W // 2, 2).mean(axis=(3, 5))


def coords_grid(batch, ht, wd):
    ygrid, xgrid = jnp.meshgrid(jnp.arange(ht), jnp.arange(wd), indexing="ij")
    coords = jnp.stack([xgrid, ygrid], axis=-1).astype(jnp.float32)  # x first
    return jnp.broadcast_to(coords[None], (batch, ht, wd, 2))


def bilinear_resize_align_corners_nhwc(x, Ho, Wo):
    N, H, W, C = x.shape
    ys = jnp.linspace(0.0, H - 1.0, Ho)
    xs = jnp.linspace(0.0, W - 1.0, Wo)
    y0 = jnp.floor(ys).astype(jnp.int32)
    x0 = jnp.floor(xs).astype(jnp.int32)
    y1 = jnp.clip(y0 + 1, 0, H - 1)
    x1 = jnp.clip(x0 + 1, 0, W - 1)
    wy = (ys - y0)[None, :, None, None]
    wx = (xs - x0)[None, None, :, None]
    Ia = x[:, y0][:, :, x0]
    Ib = x[:, y0][:, :, x1]
    Ic = x[:, y1][:, :, x0]
    Id = x[:, y1][:, :, x1]
    top = Ia * (1 - wx) + Ib * wx
    bot = Ic * (1 - wx) + Id * wx
    return top * (1 - wy) + bot * wy


def upflow8(flow):                                 # (N, h, w, 2) -> (N, 8h, 8w, 2)
    N, H, W, C = flow.shape
    return 8.0 * bilinear_resize_align_corners_nhwc(flow, 8 * H, 8 * W)


def bilinear_sampler(img, coords):
    """F.grid_sample(align_corners=True, padding_mode='zeros') equivalent.
    img: (B, C, H, W); coords: (B, h, w, 2) pixel coords (x, y)."""
    # TODO(synk): gather-based sampling stays in JAX (no clean Pallas gather path).
    B, C, H, W = img.shape
    x = coords[..., 0]
    y = coords[..., 1]
    x0 = jnp.floor(x)
    y0 = jnp.floor(y)
    x1 = x0 + 1
    y1 = y0 + 1
    bidx = jnp.arange(B)[:, None, None]

    def sample(ix, iy):
        valid = ((ix >= 0) & (ix <= W - 1) & (iy >= 0) & (iy <= H - 1)).astype(img.dtype)
        ixc = jnp.clip(ix, 0, W - 1).astype(jnp.int32)
        iyc = jnp.clip(iy, 0, H - 1).astype(jnp.int32)
        vals = img[bidx, :, iyc, ixc]              # (B, h, w, C)
        return vals * valid[..., None]

    wa = (x1 - x) * (y1 - y)
    wb = (x1 - x) * (y - y0)
    wc = (x - x0) * (y1 - y)
    wd = (x - x0) * (y - y0)
    out = (sample(x0, y0) * wa[..., None] + sample(x0, y1) * wb[..., None]
           + sample(x1, y0) * wc[..., None] + sample(x1, y1) * wd[..., None])
    return out.transpose(0, 3, 1, 2)


# ----------------------------------------------------------------------------
# Parameter construction (deterministic synthetic weights)
# ----------------------------------------------------------------------------
class _KeyGen:
    def __init__(self, key):
        self.key = key
        self.i = 0

    def __call__(self):
        self.i += 1
        return jax.random.fold_in(self.key, self.i)


def _conv_init(key, cout, cin, kh, kw):
    w = jax.random.normal(key, (cout, cin, kh, kw), jnp.float32) / math.sqrt(cin * kh * kw)
    b = jnp.zeros((cout,), jnp.float32)
    return {"w": w, "b": b}


def make_small_encoder_params(key, output_dim):
    kg = _KeyGen(key)

    def bottleneck(inp, planes, stride):
        q = planes // 4
        d = {
            "conv1": _conv_init(kg(), q, inp, 1, 1),
            "conv2": _conv_init(kg(), q, q, 3, 3),
            "conv3": _conv_init(kg(), planes, q, 1, 1),
            "stride": stride,
        }
        if stride != 1:
            d["down"] = _conv_init(kg(), planes, inp, 1, 1)
        return d

    return {
        "conv1": _conv_init(kg(), 32, 3, 7, 7),
        "layer1": [bottleneck(32, 32, 1), bottleneck(32, 32, 1)],
        "layer2": [bottleneck(32, 64, 2), bottleneck(64, 64, 1)],
        "layer3": [bottleneck(64, 96, 2), bottleneck(96, 96, 1)],
        "conv2": _conv_init(kg(), output_dim, 96, 1, 1),
    }


def make_update_block_params(key):
    kg = _KeyGen(key)
    cor_planes = CORR_LEVELS * (2 * CORR_RADIUS + 1) ** 2  # 196
    return {
        "encoder": {
            "convc1": _conv_init(kg(), 96, cor_planes, 1, 1),
            "convf1": _conv_init(kg(), 64, 2, 7, 7),
            "convf2": _conv_init(kg(), 32, 64, 3, 3),
            "conv":   _conv_init(kg(), 80, 128, 3, 3),
        },
        "gru": {
            "convz": _conv_init(kg(), HDIM, HDIM + 82 + CDIM, 3, 3),
            "convr": _conv_init(kg(), HDIM, HDIM + 82 + CDIM, 3, 3),
            "convq": _conv_init(kg(), HDIM, HDIM + 82 + CDIM, 3, 3),
        },
        "flow_head": {
            "conv1": _conv_init(kg(), 128, HDIM, 3, 3),
            "conv2": _conv_init(kg(), 2, 128, 3, 3),
        },
    }


def make_raft_params(key):
    k1, k2, k3 = jax.random.split(key, 3)
    return {
        "fnet": make_small_encoder_params(k1, 128),
        "cnet": make_small_encoder_params(k2, HDIM + CDIM),
        "update": make_update_block_params(k3),
    }


# ----------------------------------------------------------------------------
# Model sub-modules (NHWC internal layout)
# ----------------------------------------------------------------------------
def small_encoder_fwd(p, x, norm_fn):
    use_in = norm_fn == "instance"

    def cnr(y, cp, stride=1, padding=0):
        if use_in:
            return jax.nn.relu(instance_norm(conv2d(y, cp, stride=stride, padding=padding)))
        # norm is identity -> fuse the relu into the matmul epilogue
        return conv2d(y, cp, stride=stride, padding=padding, activation="relu")

    x = cnr(x, p["conv1"], stride=2, padding=3)

    def run_block(bp, x):
        y = cnr(x, bp["conv1"])
        y = cnr(y, bp["conv2"], stride=bp["stride"], padding=1)
        y = cnr(y, bp["conv3"])
        if "down" in bp:
            x = conv2d(x, bp["down"], stride=bp["stride"])
            if use_in:
                x = instance_norm(x)
        return jax.nn.relu(x + y)

    for layer in ("layer1", "layer2", "layer3"):
        for bp in p[layer]:
            x = run_block(bp, x)
    return conv2d(x, p["conv2"])


def build_corr_pyramid(fmap1, fmap2, num_levels=CORR_LEVELS):
    N, H, W, D = fmap1.shape
    f1 = fmap1.reshape(N, H * W, D)
    f2 = fmap2.reshape(N, H * W, D).transpose(0, 2, 1)      # (N, D, HW)
    corr = pallas_corr(f1, f2)                              # scaled by 1/sqrt(D)
    corr = corr.reshape(N * H * W, 1, H, W)
    pyramid = [corr]
    for _ in range(num_levels - 1):
        corr = avg_pool2(corr)
        pyramid.append(corr)
    return pyramid


def corr_lookup(pyramid, coords, radius=CORR_RADIUS):
    N, H, W, _ = coords.shape
    r = radius
    dx = jnp.linspace(-r, r, 2 * r + 1)
    dy = jnp.linspace(-r, r, 2 * r + 1)
    dyg, dxg = jnp.meshgrid(dy, dx, indexing="ij")
    delta = jnp.stack([dyg, dxg], axis=-1)   # matches torch.stack(meshgrid(dy, dx), -1)

    out_pyramid = []
    for i, corr in enumerate(pyramid):
        centroid = coords.reshape(N * H * W, 1, 1, 2) / (2.0 ** i)
        coords_lvl = centroid + delta[None]
        sampled = bilinear_sampler(corr, coords_lvl)        # (N*H*W, 1, 2r+1, 2r+1)
        out_pyramid.append(sampled.reshape(N, H, W, -1))
    return jnp.concatenate(out_pyramid, axis=-1).astype(jnp.float32)   # NHWC


def motion_encoder_fwd(p, flow, corr):
    cor = conv2d(corr, p["convc1"], activation="relu")
    flo = conv2d(flow, p["convf1"], padding=3, activation="relu")
    flo = conv2d(flo, p["convf2"], padding=1, activation="relu")
    cor_flo = jnp.concatenate([cor, flo], axis=-1)
    out = conv2d(cor_flo, p["conv"], padding=1, activation="relu")
    return jnp.concatenate([out, flow], axis=-1)


def conv_gru_fwd(p, h, x):
    """ConvGRU with convz/convr fused into one MXU matmul and fused gating."""
    N, H, W, C = h.shape
    M = N * H * W
    hx = jnp.concatenate([h, x], axis=-1)

    # z, r share the same im2col(hx); concat weight matrices along N and fuse sigmoid.
    cols, _, _ = _im2col_nhwc(hx.astype(jnp.bfloat16), 3, 3, 1, 1)
    wzr = jnp.concatenate([_weight_matrix(p["convz"]["w"]),
                           _weight_matrix(p["convr"]["w"])], axis=1)
    bzr = jnp.concatenate([p["convz"]["b"], p["convr"]["b"]])
    zr = matmul_bias_act(cols, wzr, bzr, activation="sigmoid")      # (M, 2*HDIM)
    z = zr[:, :HDIM]
    r = zr[:, HDIM:]

    h_flat = h.reshape(M, HDIM)
    rh = (r * h_flat).reshape(N, H, W, HDIM)

    qcols, _, _ = _im2col_nhwc(jnp.concatenate([rh, x], axis=-1).astype(jnp.bfloat16),
                               3, 3, 1, 1)
    q = matmul_bias_act(qcols, _weight_matrix(p["convq"]["w"]),
                        p["convq"]["b"], activation="tanh")         # (M, HDIM)

    h_new = pallas_gru_combine(z, q, h_flat)                        # (1-z)*h + z*q
    return h_new.reshape(N, H, W, HDIM)


def flow_head_fwd(p, x):
    y = conv2d(x, p["conv1"], padding=1, activation="relu")
    return conv2d(y, p["conv2"], padding=1)


def update_block_fwd(p, net, inp, corr, flow):
    motion_features = motion_encoder_fwd(p["encoder"], flow, corr)
    inp_cat = jnp.concatenate([inp, motion_features], axis=-1)
    net = conv_gru_fwd(p["gru"], net, inp_cat)
    delta_flow = flow_head_fwd(p["flow_head"], net)
    return net, None, delta_flow, motion_features  # SmallUpdateBlock -> up_mask is None


# ----------------------------------------------------------------------------
# RAFT forward (two-image path; multiframe=False, test_mode=True)
# ----------------------------------------------------------------------------
def raft_forward(params, image1, image2, iters=2):
    # NCHW input -> NHWC internal; normalize to [-1, 1]
    img1 = 2.0 * (image1.transpose(0, 2, 3, 1) / 255.0) - 1.0
    img2 = 2.0 * (image2.transpose(0, 2, 3, 1) / 255.0) - 1.0

    # fnet on the concatenated pair (RAFT list handling), instance norm
    fmaps = small_encoder_fwd(params["fnet"], jnp.concatenate([img1, img2], axis=0),
                              "instance")
    fmap1, fmap2 = jnp.split(fmaps, 2, axis=0)

    pyramid = build_corr_pyramid(fmap1.astype(jnp.float32), fmap2.astype(jnp.float32))

    cnet = small_encoder_fwd(params["cnet"], img1, "none")
    net = jnp.tanh(cnet[..., :HDIM])
    inp = jax.nn.relu(cnet[..., HDIM:HDIM + CDIM])

    N, H, W, _ = img1.shape
    coords0 = coords_grid(N, H // 8, W // 8)
    coords1 = coords_grid(N, H // 8, W // 8)

    flow_up = None
    motion_features = None
    for _ in range(iters):
        corr = corr_lookup(pyramid, coords1)                 # (N, h, w, 196)
        flow = coords1 - coords0                             # (N, h, w, 2)
        net, up_mask, delta_flow, motion_features = update_block_fwd(
            params["update"], net, inp, corr, flow)
        coords1 = coords1 + delta_flow
        # up_mask is None for the small update block -> upflow8
        flow_up = upflow8(coords1 - coords0)

    flow_lr = (coords1 - coords0).transpose(0, 3, 1, 2)
    flow_up = flow_up.transpose(0, 3, 1, 2)
    motion_features = motion_features.transpose(0, 3, 1, 2)
    return flow_lr, flow_up, motion_features


# ----------------------------------------------------------------------------
# Main
# ----------------------------------------------------------------------------
if __name__ == "__main__":
    key = jax.random.PRNGKey(0)
    k1, k2 = jax.random.split(key)
    N, C, H, W = 1, 3, 128, 128   # H, W divisible by 8; feature map 16x16
    image1 = jax.random.uniform(k1, (N, C, H, W), jnp.float32) * 255.0
    image2 = jax.random.uniform(k2, (N, C, H, W), jnp.float32) * 255.0

    params = make_raft_params(jax.random.PRNGKey(42))

    flow_lr, flow_up, motion_features = raft_forward(params, image1, image2, iters=2)
    jax.block_until_ready((flow_lr, flow_up, motion_features))

    assert flow_lr.shape == (N, 2, H // 8, W // 8)
    assert flow_up.shape == (N, 2, H, W)
    assert motion_features.shape == (N, 82, H // 8, W // 8)
    assert jnp.all(jnp.isfinite(flow_up))
    assert jnp.all(jnp.isfinite(flow_lr))

    print("KERNEL_OK")
</pallas_src>

<mosaic_0001>
module attributes {stable_mosaic.version = 11 : i64} {
  func.func @_mm_kernel_none(%arg0: i32, %arg1: memref<512x147xbf16, #tpu.memory_space<vmem>>, %arg2: memref<147x128xbf16, #tpu.memory_space<vmem>>, %arg3: memref<1x128xf32, #tpu.memory_space<vmem>>, %arg4: memref<512x128xf32, #tpu.memory_space<vmem>>) attributes {dimension_semantics = [#tpu.dimension_semantics<parallel>], iteration_bounds = array<i64: 16>, scalar_prefetch = 0 : i64, scratch_operands = 0 : i64, tpu.core_type = #tpu.core_type<tc>, window_params = [{transform_indices = @transform_0, window_bounds = array<i64: 512, 147>}, {pipeline_mode = #tpu.pipeline_mode<synchronous>, transform_indices = @transform_1, window_bounds = array<i64: 147, 128>}, {pipeline_mode = #tpu.pipeline_mode<synchronous>, transform_indices = @transform_2, window_bounds = array<i64: 1, 128>}, {transform_indices = @transform_3, window_bounds = array<i64: 512, 128>}]} {
    %c0 = arith.constant 0 : index
    %c0_0 = arith.constant 0 : index
    %0 = vector.load %arg1[%c0, %c0_0] : memref<512x147xbf16, #tpu.memory_space<vmem>>, vector<512x147xbf16>
    %c0_1 = arith.constant 0 : index
    %c0_2 = arith.constant 0 : index
    %1 = vector.load %arg2[%c0_1, %c0_2] : memref<147x128xbf16, #tpu.memory_space<vmem>>, vector<147x128xbf16>
    %cst = arith.constant dense<0.000000e+00> : vector<512x128xf32>
    %2 = tpu.matmul %0, %1, %cst {dimension_numbers = #tpu.dot_dimension_numbers<[1], [0], [0], [1], [0, 0, 1, 1], [], []>} : vector<512x147xbf16>, vector<147x128xbf16>, vector<512x128xf32> -> vector<512x128xf32>
    %c0_3 = arith.constant 0 : index
    %c0_4 = arith.constant 0 : index
    %3 = vector.load %arg3[%c0_3, %c0_4] : memref<1x128xf32, #tpu.memory_space<vmem>>, vector<1x128xf32>
    %4 = vector.broadcast %3 : vector<1x128xf32> to vector<512x128xf32>
    %5 = arith.addf %2, %4 : vector<512x128xf32>
    %c0_5 = arith.constant 0 : index
    %c0_6 = arith.constant 0 : index
    %6 = vector.load %arg4[%c0_5, %c0_6] : memref<512x128xf32, #tpu.memory_space<vmem>>, vector<512x128xf32>
    tpu.vector_store %arg4[%c0_5, %c0_6], %5 {strides = array<i32>} : memref<512x128xf32, #tpu.memory_space<vmem>>, vector<512x128xf32>,
    return
  }
  func.func @transform_0(%arg0: i32) -> (i32, i32) {
    %c0_i32 = arith.constant 0 : i32
    %c0_i32_0 = arith.constant 0 : i32
    return %arg0, %c0_i32 : i32, i32
  }
  func.func @transform_1(%arg0: i32) -> (i32, i32) {
    %c0_i32 = arith.constant 0 : i32
    %c0_i32_0 = arith.constant 0 : i32
    %c0_i32_1 = arith.constant 0 : i32
    return %c0_i32, %c0_i32_0 : i32, i32
  }
  func.func @transform_2(%arg0: i32) -> (i32, i32) {
    %c0_i32 = arith.constant 0 : i32
    %c0_i32_0 = arith.constant 0 : i32
    %c0_i32_1 = arith.constant 0 : i32
    return %c0_i32, %c0_i32_0 : i32, i32
  }
  func.func @transform_3(%arg0: i32) -> (i32, i32) {
    %c0_i32 = arith.constant 0 : i32
    %c0_i32_0 = arith.constant 0 : i32
    return %arg0, %c0_i32 : i32, i32
  }
}

</mosaic_0001>

<bundles_post_ra>
// kernel: tpu_custom_call.1
= control target key start
LH: loop header
LB: loop body
LE: loop exit
PB: predicated region body
PF: predicated region fallthrough
CT: control target
= control target key end

     0   :  { %8 = vsyncpa [#allocation3], 0  ;;  %s1891_s0 = inlined_call_operand.vmem [shape: bf16[8192,147], index: 0, kind: input, shape index: {}]   ;;  %s1892_s1 = inlined_call_operand.vmem [shape: bf16[147,128], index: 1, kind: input, shape index: {}]   ;;  %s1893_s2 = inlined_call_operand.vmem [shape: f32[1,128], index: 2, kind: input, shape index: {}]   ;;  %s1894_s3 = inlined_call_operand.hbm [shape: f32[8192,128], index: 3, kind: output, shape index: {}]  }
   0x1   :  { %10 = vsyncpa [#allocation3 + $0x1], 0  ;;  %s1522_s12 = smov 0   ;;  %s1524_s13 = smov 0  }
   0x2   :  { %s1526_s14 = smov 0   ;;  %s1528_s15 = smov 0  }
   0x3 LB: > { %s1543_s16 = sadd.s32 4294967295, %s1495_s15   ;;  %s1144_s17 = sadd.s32 4294967294, %s1495_s15   ;;  %s1495_s15 = sphi %s1528_s15, %s1900_s15   ;;  %s1491_s14 = sphi %s1526_s14, %s1899_s14   ;;  %s1487_s13 = sphi %s1524_s13, %s1898_s13   ;;  %s1483_s12 = sphi %s1522_s12, %s1897_s12  }
   0x4   : > { %s1547_s18 = sadd.s32 1, %s1495_s15   ;;  %s91_s19 = sadd.s32 1, %s1491_s14 }
   0x5   : > { %s88_s20 = ssub.s32 %s1495_s15, %s1547_s18  ;;  %p101_p0 = scmp.ne.s32.totalorder %s1491_s14, %s1487_s13 }
   0x6   : > { %p89_p1 = scmp.eq.s32.totalorder %s88_s20, 0  ;;  %p102_p2 = scmp.eq.s32.totalorder %s1543_s16, 15 }
   0x7   : > { %p107_p3 = scmp.ne.s32.totalorder %s1487_s13, %s1483_s12  ;;  %p108_p4 = scmp.eq.s32.totalorder %s1144_s17, 15 }
   0x8   : > { %s1558_s21 = scalar_select %p89_p1, %s1491_s14, %s91_s19  }
   0x9   : > { %p1560_p5 = por %p102_p2, %p101_p0  ;;  %p1564_p6 = por %p108_p4, %p107_p3 }
   0xa   : > { %p1147_p7 = scmp.ge.s32.totalorder %s1495_s15, 1  ;;  %p142_p8 = scmp.lt.s32.totalorder %s1495_s15, 17 }
   0xc   : > { %p143_p9 = pnand %p1147_p7, %p142_p8 }
   0xd   : > { %s1149_s30 = sshll.u32 (!%p143_p9), %s1543_s16, 6  ;;  %s164_s4 = sand.u32 (!%p143_p9), 1, %s1487_s13  }
   0xe   : > { %146 = sbr.rel (%p143_p9) target bundleno = 393 (0x189), region = 32  ;;  %p168_p10 = scmp.lt.s32.totalorder (!%p143_p9), %s1149_s30, 1023 }
   0xf   : > { %s1148_s5 = sshll.u32 (!%p143_p9), %s164_s4, 9  ;;  %s1499_s24 = smov (!%p143_p9), [#allocation2]  }
  0x10   : > { %s1712_s8 = scalar_lea.vmem (!%p143_p9), [#allocation2], %s1148_s5  ;;  %s1439_s25 = sshll.u32 (!%p143_p9), %s1499_s24, 4  ;;  %s1440_s25 = int_to_ptr.vmem [resolvable:$false] %s1439_s25 }
  0x11   : > { %s1082_s10 = sshll.u32 (!%p143_p9), %s1712_s8, 4  ;;  %s1441_s26 = scalar_lea.vmem (!%p143_p9), %s1440_s25, 16384  ;;  %s1843_s10 = int_to_ptr.vmem [resolvable:$true] %s1082_s10 }
  0x12   : > { %s1435_s20 = scalar_lea.vmem (!%p143_p9), %s1843_s10, 8192  ;;  %p1442_p0 = scmp.lt.s32.totalorder (!%p143_p9), %s1843_s10, %s1440_s25 }
  0x13   : > { %v1329_v0 = vld [vmem:[%s1892_s1 + $0x38] sm:$0xff]   ;;  %v1497_v1 = vmov 0   ;;  %v1330_v2 = vld [vmem:[%s1892_s1 + $0x30] sm:$0xff]   ;;  %v1331_v3 = vld [vmem:[%s1892_s1 + $0x28] sm:$0xff]   ;;  %s1902_s30 = smov (!%p168_p10, %s1149_s30), 1023  ;;  %vm611_vm0 = vcmask 154624   ;;  %p1436_p11 = scmp.ne.s32.totalorder %s1843_s10, %s1435_s20 }
  0x14   : > { %715 = vmatprep.subr.bf16.mxu0 %v1497_v1  ;;  %1266 = vmatprep.subr.bf16.mxu1 %v1497_v1  ;;  %v1332_v4 = vld [vmem:[%s1892_s1 + $0x20] sm:$0xff]   ;;  %s1264_s6 = sshll.u32 %s1902_s30, 3  ;;  %v1333_v5 = vld [vmem:[%s1892_s1 + $0x18] sm:$0xff]   ;;  %v1334_v8 = vld [vmem:[%s1892_s1 + $0x10] sm:$0xff]   ;;  %vm708_vm1 = vcmask 1040384   ;;  %vm709_vm2 = vcmask 1041408   ;;  %p1443_p1 = scmp.lt.s32.totalorder %s1441_s26, %s1435_s20 }
  0x15   : > { %716 = vmatpush1.bf16.msra.mxu0 %v1329_v0  ;;  %1276 = vmatpush1.bf16.msra.mxu1 %v1329_v0  ;;  %s1586_s9 = scalar_lea.vmem %s1891_s0, %s1264_s6  ;;  %v1335_v9 = vld [vmem:[%s1892_s1 + $0x8] sm:$0xff]   ;;  %v1498_v10 = vmov 65535   ;;  %v1336_v12 = vld [vmem:[%s1892_s1] sm:$0xff]   ;;  %p1437_p12 = pnand %p1436_p11, %p1560_p5 }
  0x16   : > { %717 = vmatprep.subr.bf16.mxu0 %v1497_v1  ;;  %1267 = vmatprep.subr.bf16.mxu1 %v1497_v1  ;;  %v1341_v6 = vld [vmem:[%s1586_s9 + $0x4] ss:$8 sps:$4 sm:$0xff]   ;;  %v710_v11 = vsel %vm708_vm1, 4294967295, %v1498_v10  ;;  %v1337_v13 = vld [vmem:[%s1892_s1 + $0x48] ss:$0 sps:$4 sm:$0x33]   ;;  %p1444_p2 = por %p1443_p1, %p1442_p0 }
  0x17   : > { %v1344_v7 = vld [vmem:[%s1586_s9 + $0x104] ss:$8 sps:$4 sm:$0xff]   ;;  %1227 = vmatprep.mubr.msk.bf16.mxu0 %vm611_vm0, %v1341_v6  ;;  %v711_v14 = vsel %vm709_vm2, %v710_v11, 0  ;;  %v1339_v17 = vld [vmem:[%s1586_s9] ss:$8 sps:$4 sm:$0xff]   ;;  %p1438_p13 = pneg %p1437_p12 }
  0x18   : > { %1243 = vmatprep.mubr.msk.bf16.mxu1 %vm611_vm0, %v1344_v7  ;;  %v713_v15 = vand.u32 %v1337_v13, %v711_v14  ;;  %v1338_v16 = vld [vmem:[%s1892_s1 + $0x40] sm:$0xff]   ;;  %v1345_v19 = vld [vmem:[%s1586_s9 + $0x14] ss:$8 sps:$4 sm:$0xff]   ;;  %v1349_v21 = vld [vmem:[%s1586_s9 + $0x10] ss:$8 sps:$4 sm:$0xff]  }
  0x19   : > { %718 = vmatpush1.bf16.msra.mxu0 %v1330_v2  ;;  %1277 = vmatpush1.bf16.msra.mxu1 %v1330_v2  ;;  %v1342_v18 = vld [vmem:[%s1586_s9 + $0x100] ss:$8 sps:$4 sm:$0xff]   ;;  %v1347_v20 = vld [vmem:[%s1586_s9 + $0x114] ss:$8 sps:$4 sm:$0xff]   ;;  %v1350_v22 = vld [vmem:[%s1586_s9 + $0x110] ss:$8 sps:$4 sm:$0xff]   ;;  %p1445_p3 = pnand %p1444_p2, %p1438_p13 }
  0x1a   : > { %719 = vmatprep.subr.bf16.mxu0 %v1497_v1  ;;  %1268 = vmatprep.subr.bf16.mxu1 %v1497_v1  ;;  %v1351_v23 = vld [vmem:[%s1586_s9 + $0x24] ss:$8 sps:$4 sm:$0xff]   ;;  %v1355_v25 = vld [vmem:[%s1586_s9 + $0x20] ss:$8 sps:$4 sm:$0xff]   ;;  %v1357_v27 = vld [vmem:[%s1586_s9 + $0x34] ss:$8 sps:$4 sm:$0xff]  }
  0x1b   : > { %v1353_v24 = vld [vmem:[%s1586_s9 + $0x124] ss:$8 sps:$4 sm:$0xff]   ;;  %v1356_v26 = vld [vmem:[%s1586_s9 + $0x120] ss:$8 sps:$4 sm:$0xff]   ;;  %v1359_v28 = vld [vmem:[%s1586_s9 + $0x134] ss:$8 sps:$4 sm:$0xff]  }
  0x1c   : > { %v1361_v29 = vld [vmem:[%s1586_s9 + $0x30] ss:$8 sps:$4 sm:$0xff]   ;;  %v1363_v31 = vld [vmem:[%s1586_s9 + $0x44] ss:$8 sps:$4 sm:$0xff]   ;;  %v1367_v33 = vld [vmem:[%s1586_s9 + $0x40] ss:$8 sps:$4 sm:$0xff]  }
  0x1d   : > { %720 = vmatpush1.bf16.msra.mxu0 %v1331_v3  ;;  %1278 = vmatpush1.bf16.msra.mxu1 %v1331_v3  ;;  %v1362_v30 = vld [vmem:[%s1586_s9 + $0x130] ss:$8 sps:$4 sm:$0xff]   ;;  %v1365_v32 = vld [vmem:[%s1586_s9 + $0x144] ss:$8 sps:$4 sm:$0xff]   ;;  %v1368_v34 = vld [vmem:[%s1586_s9 + $0x140] ss:$8 sps:$4 sm:$0xff]  }
  0x1e   : > { %721 = vmatprep.subr.bf16.mxu0 %v1497_v1  ;;  %1269 = vmatprep.subr.bf16.mxu1 %v1497_v1  ;;  %v1369_v35 = vld [vmem:[%s1586_s9 + $0x54] ss:$8 sps:$4 sm:$0xff]   ;;  %v1373_v37 = vld [vmem:[%s1586_s9 + $0x50] ss:$8 sps:$4 sm:$0xff]   ;;  %v1375_v39 = vld [vmem:[%s1586_s9 + $0x64] ss:$8 sps:$4 sm:$0xff]  }
  0x1f   : > { %v1371_v36 = vld [vmem:[%s1586_s9 + $0x154] ss:$8 sps:$4 sm:$0xff]   ;;  %v1374_v38 = vld [vmem:[%s1586_s9 + $0x150] ss:$8 sps:$4 sm:$0xff]   ;;  %v1377_v40 = vld [vmem:[%s1586_s9 + $0x164] ss:$8 sps:$4 sm:$0xff]  }
  0x20   : > { %v1379_v41 = vld [vmem:[%s1586_s9 + $0x60] ss:$8 sps:$4 sm:$0xff]   ;;  %v1381_v43 = vld [vmem:[%s1586_s9 + $0x74] ss:$8 sps:$4 sm:$0xff]   ;;  %v1385_v45 = vld [vmem:[%s1586_s9 + $0x70] ss:$8 sps:$4 sm:$0xff]  }
  0x21   : > { %722 = vmatpush1.bf16.msra.mxu0 %v1332_v4  ;;  %1279 = vmatpush1.bf16.msra.mxu1 %v1332_v4  ;;  %v1380_v42 = vld [vmem:[%s1586_s9 + $0x160] ss:$8 sps:$4 sm:$0xff]   ;;  %v1383_v44 = vld [vmem:[%s1586_s9 + $0x174] ss:$8 sps:$4 sm:$0xff]   ;;  %v1386_v46 = vld [vmem:[%s1586_s9 + $0x170] ss:$8 sps:$4 sm:$0xff]  }
  0x22   : > { %723 = vmatprep.subr.bf16.mxu0 %v1497_v1  ;;  %1270 = vmatprep.subr.bf16.mxu1 %v1497_v1  ;;  %v1387_v47 = vld [vmem:[%s1586_s9 + $0x84] ss:$8 sps:$4 sm:$0xff]   ;;  %v1391_v49 = vld [vmem:[%s1586_s9 + $0x80] ss:$8 sps:$4 sm:$0xff]   ;;  %v1393_v51 = vld [vmem:[%s1586_s9 + $0x94] ss:$8 sps:$4 sm:$0xff]  }
  0x23   : > { %v1389_v48 = vld [vmem:[%s1586_s9 + $0x184] ss:$8 sps:$4 sm:$0xff]   ;;  %v1392_v50 = vld [vmem:[%s1586_s9 + $0x180] ss:$8 sps:$4 sm:$0xff]   ;;  %v1395_v52 = vld [vmem:[%s1586_s9 + $0x194] ss:$8 sps:$4 sm:$0xff]  }
  0x24   : > { %v1397_v53 = vld [vmem:[%s1586_s9 + $0x90] ss:$8 sps:$4 sm:$0xff]   ;;  %v1399_v55 = vld [vmem:[%s1586_s9 + $0xa4] ss:$8 sps:$4 sm:$0xff]   ;;  %v1403_v57 = vld [vmem:[%s1586_s9 + $0xa0] ss:$8 sps:$4 sm:$0xff]  }
  0x25   : > { %724 = vmatpush1.bf16.msra.mxu0 %v1333_v5  ;;  %1280 = vmatpush1.bf16.msra.mxu1 %v1333_v5  ;;  %v1398_v54 = vld [vmem:[%s1586_s9 + $0x190] ss:$8 sps:$4 sm:$0xff]   ;;  %v1401_v56 = vld [vmem:[%s1586_s9 + $0x1a4] ss:$8 sps:$4 sm:$0xff]   ;;  %v1404_v58 = vld [vmem:[%s1586_s9 + $0x1a0] ss:$8 sps:$4 sm:$0xff]  }
  0x26   : > { %725 = vmatprep.subr.bf16.mxu0 %v1497_v1  ;;  %1271 = vmatprep.subr.bf16.mxu1 %v1497_v1  ;;  %v1405_v59 = vld [vmem:[%s1586_s9 + $0xb4] ss:$8 sps:$4 sm:$0xff]   ;;  %v1409_v61 = vld [vmem:[%s1586_s9 + $0xb0] ss:$8 sps:$4 sm:$0xff]   ;;  %v1411_v63 = vld [vmem:[%s1586_s9 + $0xc4] ss:$8 sps:$4 sm:$0xff]  }
  0x27   : > { %v1407_v60 = vld [vmem:[%s1586_s9 + $0x1b4] ss:$8 sps:$4 sm:$0xff]   ;;  %v1410_v62 = vld [vmem:[%s1586_s9 + $0x1b0] ss:$8 sps:$4 sm:$0xff]   ;;  %v1413_v0 = vld [vmem:[%s1586_s9 + $0x1c4] ss:$8 sps:$4 sm:$0xff]  }
  0x28   : > { %v1416_v2 = vld [vmem:[%s1586_s9 + $0x1c0] ss:$8 sps:$4 sm:$0xff]   ;;  %v1417_v3 = vld [vmem:[%s1586_s9 + $0xd4] ss:$8 sps:$4 sm:$0xff]   ;;  %v1421_v5 = vld [vmem:[%s1586_s9 + $0xd0] ss:$8 sps:$4 sm:$0xff]  }
  0x29   : > { %726 = vmatpush1.bf16.msra.mxu0 %v1334_v8  ;;  %1281 = vmatpush1.bf16.msra.mxu1 %v1334_v8  ;;  %v1419_v4 = vld [vmem:[%s1586_s9 + $0x1d4] ss:$8 sps:$4 sm:$0xff]   ;;  %v1422_v6 = vld [vmem:[%s1586_s9 + $0x1d0] ss:$8 sps:$4 sm:$0xff]   ;;  %v1423_v7 = vld [vmem:[%s1586_s9 + $0xe4] ss:$8 sps:$4 sm:$0xff]  }
  0x2a   : > { %727 = vmatprep.subr.bf16.mxu0 %v1497_v1  ;;  %1272 = vmatprep.subr.bf16.mxu1 %v1497_v1  ;;  %v1425_v8 = vld [vmem:[%s1586_s9 + $0x1e4] ss:$8 sps:$4 sm:$0xff]   ;;  %v1428_v10 = vld [vmem:[%s1586_s9 + $0x1e0] ss:$8 sps:$4 sm:$0xff]   ;;  %v1429_v11 = vld [vmem:[%s1586_s9 + $0xf4] ss:$8 sps:$4 sm:$0xff]  }
  0x2b   : > { %v1433_v13 = vld [vmem:[%s1586_s9 + $0xf0] ss:$8 sps:$4 sm:$0xff]  }
  0x2c   : > { %v1434_v14 = vld [vmem:[%s1586_s9 + $0x1f0] ss:$8 sps:$4 sm:$0xff]  }
  0x2d   : > { %728 = vmatpush1.bf16.msra.mxu0 %v1335_v9  ;;  %1282 = vmatpush1.bf16.msra.mxu1 %v1335_v9  ;;  %v1427_v9 = vld [vmem:[%s1586_s9 + $0xe0] ss:$8 sps:$4 sm:$0xff]  }
  0x2e   : > { %729 = vmatprep.subr.bf16.mxu0 %v1497_v1  ;;  %1273 = vmatprep.subr.bf16.mxu1 %v1497_v1 }
  0x31   : > { %730 = vmatpush1.bf16.msra.mxu0 %v1336_v12  ;;  %1283 = vmatpush1.bf16.msra.mxu1 %v1336_v12  ;;  %v1431_v12 = vld [vmem:[%s1586_s9 + $0x1f4] ss:$8 sps:$4 sm:$0xff]  }
  0x32   : > { %743 = vmatprep.subr.bf16.mxu0 %v1497_v1  ;;  %1274 = vmatprep.subr.bf16.mxu1 %v1497_v1 }
  0x35   : > { %744 = vmatpush2.bf16.msra.mxu0 %v713_v15  ;;  %1284 = vmatpush2.bf16.msra.mxu1 %v713_v15  ;;  %v1708_v15 = vld [vmem:[%s1893_s2] ss:$0 sm:$0xff] }
  0x36   : > { %745 = vmatprep.subr.bf16.mxu0 %v1497_v1  ;;  %1275 = vmatprep.subr.bf16.mxu1 %v1497_v1  ;;  %v1415_v1 = vld [vmem:[%s1586_s9 + $0xc0] ss:$8 sps:$4 sm:$0xff]   ;;  %s1265_s9 = sshll.u32 %s1543_s16, 13  ;;  %s1851_s16 = scalar_lea.sflag [#allocation3], %s164_s4 }
  0x37   : > { %s1841_s19 = scalar_lea.hbm %s1894_s3, %s1265_s9 }
  0x39   : > { %746 = vmatpush2.bf16.msra.mxu0 %v1338_v16  ;;  %1285 = vmatpush2.bf16.msra.mxu1 %v1338_v16 }
  0x3c   : > { %748 = vmatmul.mubr.bf16.vlgmr.msra.gmra.mxu0 %v1339_v17  ;;  %876 = vmatmul.mubr.bf16.vlgmr.msra.gmra.mxu1 %v1342_v18 }
  0x3d   : > { %1228 = vmatprep.mubr.msk.bf16.mxu0 %vm611_vm0, %v1345_v19  ;;  %1244 = vmatprep.mubr.msk.bf16.mxu1 %vm611_vm0, %v1347_v20 }
  0x44   : > { %756 = vmatmul.mubr.bf16.gmra.mxu0 %v1349_v21  ;;  %884 = vmatmul.mubr.bf16.gmra.mxu1 %v1350_v22 }
  0x45   : > { %1229 = vmatprep.mubr.msk.bf16.mxu0 %vm611_vm0, %v1351_v23  ;;  %1245 = vmatprep.mubr.msk.bf16.mxu1 %vm611_vm0, %v1353_v24 }
  0x4c   : > { %764 = vmatmul.mubr.bf16.gmra.mxu0 %v1355_v25  ;;  %892 = vmatmul.mubr.bf16.gmra.mxu1 %v1356_v26 }
  0x4d   : > { %1230 = vmatprep.mubr.msk.bf16.mxu0 %vm611_vm0, %v1357_v27  ;;  %1246 = vmatprep.mubr.msk.bf16.mxu1 %vm611_vm0, %v1359_v28 }
  0x54   : > { %772 = vmatmul.mubr.bf16.gmra.mxu0 %v1361_v29  ;;  %900 = vmatmul.mubr.bf16.gmra.mxu1 %v1362_v30 }
  0x55   : > { %1231 = vmatprep.mubr.msk.bf16.mxu0 %vm611_vm0, %v1363_v31  ;;  %1247 = vmatprep.mubr.msk.bf16.mxu1 %vm611_vm0, %v1365_v32 }
  0x5c   : > { %780 = vmatmul.mubr.bf16.gmra.mxu0 %v1367_v33  ;;  %908 = vmatmul.mubr.bf16.gmra.mxu1 %v1368_v34 }
  0x5d   : > { %1232 = vmatprep.mubr.msk.bf16.mxu0 %vm611_vm0, %v1369_v35  ;;  %1248 = vmatprep.mubr.msk.bf16.mxu1 %vm611_vm0, %v1371_v36 }
  0x64   : > { %788 = vmatmul.mubr.bf16.gmra.mxu0 %v1373_v37  ;;  %916 = vmatmul.mubr.bf16.gmra.mxu1 %v1374_v38 }
  0x65   : > { %1233 = vmatprep.mubr.msk.bf16.mxu0 %vm611_vm0, %v1375_v39  ;;  %1249 = vmatprep.mubr.msk.bf16.mxu1 %vm611_vm0, %v1377_v40 }
  0x6c   : > { %796 = vmatmul.mubr.bf16.gmra.mxu0 %v1379_v41  ;;  %924 = vmatmul.mubr.bf16.gmra.mxu1 %v1380_v42 }
  0x6d   : > { %1234 = vmatprep.mubr.msk.bf16.mxu0 %vm611_vm0, %v1381_v43  ;;  %1250 = vmatprep.mubr.msk.bf16.mxu1 %vm611_vm0, %v1383_v44 }
  0x74   : > { %804 = vmatmul.mubr.bf16.gmra.mxu0 %v1385_v45  ;;  %932 = vmatmul.mubr.bf16.gmra.mxu1 %v1386_v46 }
  0x75   : > { %1235 = vmatprep.mubr.msk.bf16.mxu0 %vm611_vm0, %v1387_v47  ;;  %1251 = vmatprep.mubr.msk.bf16.mxu1 %vm611_vm0, %v1389_v48 }
  0x7c   : > { %812 = vmatmul.mubr.bf16.gmra.mxu0 %v1391_v49  ;;  %940 = vmatmul.mubr.bf16.gmra.mxu1 %v1392_v50 }
  0x7d   : > { %1236 = vmatprep.mubr.msk.bf16.mxu0 %vm611_vm0, %v1393_v51  ;;  %1252 = vmatprep.mubr.msk.bf16.mxu1 %vm611_vm0, %v1395_v52 }
  0x84   : > { %820 = vmatmul.mubr.bf16.gmra.mxu0 %v1397_v53  ;;  %948 = vmatmul.mubr.bf16.gmra.mxu1 %v1398_v54 }
  0x85   : > { %1237 = vmatprep.mubr.msk.bf16.mxu0 %vm611_vm0, %v1399_v55  ;;  %1253 = vmatprep.mubr.msk.bf16.mxu1 %vm611_vm0, %v1401_v56 }
  0x8c   : > { %828 = vmatmul.mubr.bf16.gmra.mxu0 %v1403_v57  ;;  %956 = vmatmul.mubr.bf16.gmra.mxu1 %v1404_v58 }
  0x8d   : > { %1238 = vmatprep.mubr.msk.bf16.mxu0 %vm611_vm0, %v1405_v59  ;;  %1254 = vmatprep.mubr.msk.bf16.mxu1 %vm611_vm0, %v1407_v60 }
  0x94   : > { %836 = vmatmul.mubr.bf16.gmra.mxu0 %v1409_v61  ;;  %964 = vmatmul.mubr.bf16.gmra.mxu1 %v1410_v62 }
  0x95   : > { %1239 = vmatprep.mubr.msk.bf16.mxu0 %vm611_vm0, %v1411_v63  ;;  %1255 = vmatprep.mubr.msk.bf16.mxu1 %vm611_vm0, %v1413_v0 }
  0x9c   : > { %844 = vmatmul.mubr.bf16.gmra.mxu0 %v1415_v1  ;;  %972 = vmatmul.mubr.bf16.gmra.mxu1 %v1416_v2 }
  0x9d   : > { %1240 = vmatprep.mubr.msk.bf16.mxu0 %vm611_vm0, %v1417_v3  ;;  %1256 = vmatprep.mubr.msk.bf16.mxu1 %vm611_vm0, %v1419_v4 }
  0xa4   : > { %852 = vmatmul.mubr.bf16.gmra.mxu0 %v1421_v5  ;;  %980 = vmatmul.mubr.bf16.gmra.mxu1 %v1422_v6 }
  0xa5   : > { %1241 = vmatprep.mubr.msk.bf16.mxu0 %vm611_vm0, %v1423_v7  ;;  %1257 = vmatprep.mubr.msk.bf16.mxu1 %vm611_vm0, %v1425_v8 }
  0xac   : > { %860 = vmatmul.mubr.bf16.gmra.mxu0 %v1427_v9  ;;  %988 = vmatmul.mubr.bf16.gmra.mxu1 %v1428_v10 }
  0xad   : > { %1242 = vmatprep.mubr.msk.bf16.mxu0 %vm611_vm0, %v1429_v11  ;;  %1258 = vmatprep.mubr.msk.bf16.mxu1 %vm611_vm0, %v1431_v12 }
  0xb4   : > { %868 = vmatmul.mubr.bf16.gmra.mxu0 %v1433_v13  ;;  %996 = vmatmul.mubr.bf16.gmra.mxu1 %v1434_v14 }
  0xfc   : > { %v749_v16 = vpop.f32.mrf.mxu0  ;;  %v877_v17 = vpop.f32.mrf.mxu1 }
  0xfd   : > { %v750_v18 = vadd.f32 %v1708_v15, %v749_v16  ;;  %v878_v19 = vadd.f32 %v1708_v15, %v877_v17 }
  0xfe   : > { %v751_v20 = vpop.f32.mrf.mxu0  ;;  %v879_v21 = vpop.f32.mrf.mxu1 }
  0xff   : > { %1004 = vst [vmem:[%s1712_s8] sm:$0xff] %v750_v18  ;;  %1036 = vst [vmem:[%s1712_s8 + $0x100] sm:$0xff] %v878_v19 }
 0x100   : > { %v752_v22 = vpop.f32.mrf.mxu0  ;;  %v880_v23 = vpop.f32.mrf.mxu1 }
 0x101   : > { %v753_v24 = vadd.f32 %v1708_v15, %v752_v22  ;;  %v881_v25 = vadd.f32 %v1708_v15, %v880_v23 }
 0x102   : > { %v754_v26 = vpop.f32.mrf.mxu0  ;;  %v882_v27 = vpop.f32.mrf.mxu1 }
 0x103   : > { %1005 = vst [vmem:[%s1712_s8 + $0x8] sm:$0xff] %v753_v24  ;;  %1037 = vst [vmem:[%s1712_s8 + $0x108] sm:$0xff] %v881_v25 }
 0x104   : > { %v757_v28 = vpop.f32.mrf.mxu0  ;;  %v885_v29 = vpop.f32.mrf.mxu1 }
 0x105   : > { %v758_v30 = vadd.f32 %v1708_v15, %v757_v28  ;;  %v886_v31 = vadd.f32 %v1708_v15, %v885_v29 }
 0x106   : > { %v759_v32 = vpop.f32.mrf.mxu0  ;;  %v887_v33 = vpop.f32.mrf.mxu1 }
 0x107   : > { %1006 = vst [vmem:[%s1712_s8 + $0x10] sm:$0xff] %v758_v30  ;;  %1038 = vst [vmem:[%s1712_s8 + $0x110] sm:$0xff] %v886_v31 }
 0x108   : > { %v760_v34 = vpop.f32.mrf.mxu0  ;;  %v888_v35 = vpop.f32.mrf.mxu1 }
 0x109   : > { %v761_v36 = vadd.f32 %v1708_v15, %v760_v34  ;;  %v889_v37 = vadd.f32 %v1708_v15, %v888_v35 }
 0x10a   : > { %v762_v38 = vpop.f32.mrf.mxu0  ;;  %v890_v39 = vpop.f32.mrf.mxu1 }
 0x10b   : > { %1007 = vst [vmem:[%s1712_s8 + $0x18] sm:$0xff] %v761_v36  ;;  %1039 = vst [vmem:[%s1712_s8 + $0x118] sm:$0xff] %v889_v37 }
 0x10c   : > { %v765_v40 = vpop.f32.mrf.mxu0  ;;  %v893_v41 = vpop.f32.mrf.mxu1 }
 0x10d   : > { %v766_v42 = vadd.f32 %v1708_v15, %v765_v40  ;;  %v894_v43 = vadd.f32 %v1708_v15, %v893_v41 }
 0x10e   : > { %v767_v44 = vpop.f32.mrf.mxu0  ;;  %v895_v45 = vpop.f32.mrf.mxu1 }
 0x10f   : > { %1008 = vst [vmem:[%s1712_s8 + $0x20] sm:$0xff] %v766_v42  ;;  %1040 = vst [vmem:[%s1712_s8 + $0x120] sm:$0xff] %v894_v43 }
 0x110   : > { %v768_v46 = vpop.f32.mrf.mxu0  ;;  %v896_v47 = vpop.f32.mrf.mxu1 }
 0x111   : > { %v769_v48 = vadd.f32 %v1708_v15, %v768_v46  ;;  %v897_v49 = vadd.f32 %v1708_v15, %v896_v47 }
 0x112   : > { %v770_v50 = vpop.f32.mrf.mxu0  ;;  %v898_v51 = vpop.f32.mrf.mxu1 }
 0x113   : > { %1009 = vst [vmem:[%s1712_s8 + $0x28] sm:$0xff] %v769_v48  ;;  %1041 = vst [vmem:[%s1712_s8 + $0x128] sm:$0xff] %v897_v49 }
 0x114   : > { %v773_v52 = vpop.f32.mrf.mxu0  ;;  %v901_v53 = vpop.f32.mrf.mxu1 }
 0x115   : > { %v774_v54 = vadd.f32 %v1708_v15, %v773_v52  ;;  %v902_v55 = vadd.f32 %v1708_v15, %v901_v53 }
 0x116   : > { %v775_v56 = vpop.f32.mrf.mxu0  ;;  %v903_v57 = vpop.f32.mrf.mxu1 }
 0x117   : > { %1010 = vst [vmem:[%s1712_s8 + $0x30] sm:$0xff] %v774_v54  ;;  %1042 = vst [vmem:[%s1712_s8 + $0x130] sm:$0xff] %v902_v55 }
 0x118   : > { %v776_v58 = vpop.f32.mrf.mxu0  ;;  %v904_v59 = vpop.f32.mrf.mxu1 }
 0x119   : > { %v777_v60 = vadd.f32 %v1708_v15, %v776_v58  ;;  %v905_v61 = vadd.f32 %v1708_v15, %v904_v59 }
 0x11a   : > { %v778_v62 = vpop.f32.mrf.mxu0  ;;  %v906_v63 = vpop.f32.mrf.mxu1 }
 0x11b   : > { %1011 = vst [vmem:[%s1712_s8 + $0x38] sm:$0xff] %v777_v60  ;;  %1043 = vst [vmem:[%s1712_s8 + $0x138] sm:$0xff] %v905_v61 }
 0x11c   : > { %v781_v0 = vpop.f32.mrf.mxu0  ;;  %v909_v1 = vpop.f32.mrf.mxu1 }
 0x11d   : > { %v782_v2 = vadd.f32 %v1708_v15, %v781_v0  ;;  %v910_v3 = vadd.f32 %v1708_v15, %v909_v1 }
 0x11e   : > { %v783_v4 = vpop.f32.mrf.mxu0  ;;  %v911_v5 = vpop.f32.mrf.mxu1 }
 0x11f   : > { %1012 = vst [vmem:[%s1712_s8 + $0x40] sm:$0xff] %v782_v2  ;;  %1044 = vst [vmem:[%s1712_s8 + $0x140] sm:$0xff] %v910_v3 }
 0x120   : > { %v784_v6 = vpop.f32.mrf.mxu0  ;;  %v912_v7 = vpop.f32.mrf.mxu1 }
 0x121   : > { %v785_v8 = vadd.f32 %v1708_v15, %v784_v6  ;;  %v913_v9 = vadd.f32 %v1708_v15, %v912_v7 }
 0x122   : > { %v786_v10 = vpop.f32.mrf.mxu0  ;;  %v914_v11 = vpop.f32.mrf.mxu1 }
 0x123   : > { %1013 = vst [vmem:[%s1712_s8 + $0x48] sm:$0xff] %v785_v8  ;;  %1045 = vst [vmem:[%s1712_s8 + $0x148] sm:$0xff] %v913_v9 }
 0x124   : > { %v789_v12 = vpop.f32.mrf.mxu0  ;;  %v917_v13 = vpop.f32.mrf.mxu1 }
 0x125   : > { %v790_v14 = vadd.f32 %v1708_v15, %v789_v12  ;;  %v918_v16 = vadd.f32 %v1708_v15, %v917_v13 }
 0x126   : > { %v791_v17 = vpop.f32.mrf.mxu0  ;;  %v919_v18 = vpop.f32.mrf.mxu1 }
 0x127   : > { %1014 = vst [vmem:[%s1712_s8 + $0x50] sm:$0xff] %v790_v14  ;;  %1046 = vst [vmem:[%s1712_s8 + $0x150] sm:$0xff] %v918_v16 }
 0x128   : > { %v792_v19 = vpop.f32.mrf.mxu0  ;;  %v920_v20 = vpop.f32.mrf.mxu1 }
 0x129   : > { %v793_v21 = vadd.f32 %v1708_v15, %v792_v19  ;;  %v921_v22 = vadd.f32 %v1708_v15, %v920_v20 }
 0x12a   : > { %v794_v23 = vpop.f32.mrf.mxu0  ;;  %v922_v24 = vpop.f32.mrf.mxu1 }
 0x12b   : > { %1015 = vst [vmem:[%s1712_s8 + $0x58] sm:$0xff] %v793_v21  ;;  %1047 = vst [vmem:[%s1712_s8 + $0x158] sm:$0xff] %v921_v22 }
 0x12c   : > { %v797_v25 = vpop.f32.mrf.mxu0  ;;  %v925_v26 = vpop.f32.mrf.mxu1 }
 0x12d   : > { %v798_v27 = vadd.f32 %v1708_v15, %v797_v25  ;;  %v926_v28 = vadd.f32 %v1708_v15, %v925_v26 }
 0x12e   : > { %v799_v29 = vpop.f32.mrf.mxu0  ;;  %v927_v30 = vpop.f32.mrf.mxu1 }
 0x12f   : > { %1016 = vst [vmem:[%s1712_s8 + $0x60] sm:$0xff] %v798_v27  ;;  %1048 = vst [vmem:[%s1712_s8 + $0x160] sm:$0xff] %v926_v28 }
 0x130   : > { %v800_v31 = vpop.f32.mrf.mxu0  ;;  %v928_v32 = vpop.f32.mrf.mxu1 }
 0x131   : > { %v801_v33 = vadd.f32 %v1708_v15, %v800_v31  ;;  %v929_v34 = vadd.f32 %v1708_v15, %v928_v32 }
 0x132   : > { %v802_v35 = vpop.f32.mrf.mxu0  ;;  %v930_v36 = vpop.f32.mrf.mxu1 }
 0x133   : > { %1017 = vst [vmem:[%s1712_s8 + $0x68] sm:$0xff] %v801_v33  ;;  %1049 = vst [vmem:[%s1712_s8 + $0x168] sm:$0xff] %v929_v34 }
 0x134   : > { %v805_v37 = vpop.f32.mrf.mxu0  ;;  %v933_v38 = vpop.f32.mrf.mxu1 }
 0x135   : > { %v806_v39 = vadd.f32 %v1708_v15, %v805_v37  ;;  %v934_v40 = vadd.f32 %v1708_v15, %v933_v38 }
 0x136   : > { %v807_v41 = vpop.f32.mrf.mxu0  ;;  %v935_v42 = vpop.f32.mrf.mxu1 }
 0x137   : > { %1018 = vst [vmem:[%s1712_s8 + $0x70] sm:$0xff] %v806_v39  ;;  %1050 = vst [vmem:[%s1712_s8 + $0x170] sm:$0xff] %v934_v40 }
 0x138   : > { %v808_v43 = vpop.f32.mrf.mxu0  ;;  %v936_v44 = vpop.f32.mrf.mxu1 }
 0x139   : > { %v809_v45 = vadd.f32 %v1708_v15, %v808_v43  ;;  %v937_v46 = vadd.f32 %v1708_v15, %v936_v44 }
 0x13a   : > { %v810_v47 = vpop.f32.mrf.mxu0  ;;  %v938_v48 = vpop.f32.mrf.mxu1 }
 0x13b   : > { %1019 = vst [vmem:[%s1712_s8 + $0x78] sm:$0xff] %v809_v45  ;;  %1051 = vst [vmem:[%s1712_s8 + $0x178] sm:$0xff] %v937_v46 }
 0x13c   : > { %v813_v49 = vpop.f32.mrf.mxu0  ;;  %v941_v50 = vpop.f32.mrf.mxu1 }
 0x13d   : > { %v814_v51 = vadd.f32 %v1708_v15, %v813_v49  ;;  %v942_v52 = vadd.f32 %v1708_v15, %v941_v50 }
 0x13e   : > { %v815_v53 = vpop.f32.mrf.mxu0  ;;  %v943_v54 = vpop.f32.mrf.mxu1 }
 0x13f   : > { %1020 = vst [vmem:[%s1712_s8 + $0x80] sm:$0xff] %v814_v51  ;;  %1052 = vst [vmem:[%s1712_s8 + $0x180] sm:$0xff] %v942_v52 }
 0x140   : > { %v816_v55 = vpop.f32.mrf.mxu0  ;;  %v944_v56 = vpop.f32.mrf.mxu1 }
 0x141   : > { %v817_v57 = vadd.f32 %v1708_v15, %v816_v55  ;;  %v945_v58 = vadd.f32 %v1708_v15, %v944_v56 }
 0x142   : > { %v818_v59 = vpop.f32.mrf.mxu0  ;;  %v946_v60 = vpop.f32.mrf.mxu1 }
 0x143   : > { %1021 = vst [vmem:[%s1712_s8 + $0x88] sm:$0xff] %v817_v57  ;;  %1053 = vst [vmem:[%s1712_s8 + $0x188] sm:$0xff] %v945_v58 }
 0x144   : > { %v821_v61 = vpop.f32.mrf.mxu0  ;;  %v949_v62 = vpop.f32.mrf.mxu1 }
 0x145   : > { %v822_v63 = vadd.f32 %v1708_v15, %v821_v61  ;;  %v950_v0 = vadd.f32 %v1708_v15, %v949_v62 }
 0x146   : > { %v823_v1 = vpop.f32.mrf.mxu0  ;;  %v951_v2 = vpop.f32.mrf.mxu1 }
 0x147   : > { %1022 = vst [vmem:[%s1712_s8 + $0x90] sm:$0xff] %v822_v63  ;;  %1054 = vst [vmem:[%s1712_s8 + $0x190] sm:$0xff] %v950_v0 }
 0x148   : > { %v824_v3 = vpop.f32.mrf.mxu0  ;;  %v952_v4 = vpop.f32.mrf.mxu1 }
 0x149   : > { %v825_v5 = vadd.f32 %v1708_v15, %v824_v3  ;;  %v953_v6 = vadd.f32 %v1708_v15, %v952_v4 }
 0x14a   : > { %v826_v7 = vpop.f32.mrf.mxu0  ;;  %v954_v8 = vpop.f32.mrf.mxu1 }
 0x14b   : > { %1023 = vst [vmem:[%s1712_s8 + $0x98] sm:$0xff] %v825_v5  ;;  %1055 = vst [vmem:[%s1712_s8 + $0x198] sm:$0xff] %v953_v6 }
 0x14c   : > { %v829_v9 = vpop.f32.mrf.mxu0  ;;  %v957_v10 = vpop.f32.mrf.mxu1 }
 0x14d   : > { %v830_v11 = vadd.f32 %v1708_v15, %v829_v9  ;;  %v958_v12 = vadd.f32 %v1708_v15, %v957_v10 }
 0x14e   : > { %v831_v13 = vpop.f32.mrf.mxu0  ;;  %v959_v14 = vpop.f32.mrf.mxu1 }
 0x14f   : > { %1024 = vst [vmem:[%s1712_s8 + $0xa0] sm:$0xff] %v830_v11  ;;  %1056 = vst [vmem:[%s1712_s8 + $0x1a0] sm:$0xff] %v958_v12 }
 0x150   : > { %v832_v16 = vpop.f32.mrf.mxu0  ;;  %v960_v17 = vpop.f32.mrf.mxu1 }
 0x151   : > { %v833_v18 = vadd.f32 %v1708_v15, %v832_v16  ;;  %v961_v19 = vadd.f32 %v1708_v15, %v960_v17 }
 0x152   : > { %v834_v20 = vpop.f32.mrf.mxu0  ;;  %v962_v21 = vpop.f32.mrf.mxu1 }
 0x153   : > { %1025 = vst [vmem:[%s1712_s8 + $0xa8] sm:$0xff] %v833_v18  ;;  %1057 = vst [vmem:[%s1712_s8 + $0x1a8] sm:$0xff] %v961_v19 }
 0x154   : > { %v837_v22 = vpop.f32.mrf.mxu0  ;;  %v965_v23 = vpop.f32.mrf.mxu1 }
 0x155   : > { %v838_v24 = vadd.f32 %v1708_v15, %v837_v22  ;;  %v966_v25 = vadd.f32 %v1708_v15, %v965_v23 }
 0x156   : > { %v839_v26 = vpop.f32.mrf.mxu0  ;;  %v967_v27 = vpop.f32.mrf.mxu1 }
 0x157   : > { %1026 = vst [vmem:[%s1712_s8 + $0xb0] sm:$0xff] %v838_v24  ;;  %1058 = vst [vmem:[%s1712_s8 + $0x1b0] sm:$0xff] %v966_v25 }
 0x158   : > { %v840_v28 = vpop.f32.mrf.mxu0  ;;  %v968_v29 = vpop.f32.mrf.mxu1 }
 0x159   : > { %v841_v30 = vadd.f32 %v1708_v15, %v840_v28  ;;  %v969_v31 = vadd.f32 %v1708_v15, %v968_v29 }
 0x15a   : > { %v842_v32 = vpop.f32.mrf.mxu0  ;;  %v970_v33 = vpop.f32.mrf.mxu1 }
 0x15b   : > { %1027 = vst [vmem:[%s1712_s8 + $0xb8] sm:$0xff] %v841_v30  ;;  %1059 = vst [vmem:[%s1712_s8 + $0x1b8] sm:$0xff] %v969_v31 }
 0x15c   : > { %v845_v34 = vpop.f32.mrf.mxu0  ;;  %v973_v35 = vpop.f32.mrf.mxu1 }
 0x15d   : > { %v846_v36 = vadd.f32 %v1708_v15, %v845_v34  ;;  %v974_v37 = vadd.f32 %v1708_v15, %v973_v35 }
 0x15e   : > { %v847_v38 = vpop.f32.mrf.mxu0  ;;  %v975_v39 = vpop.f32.mrf.mxu1 }
 0x15f   : > { %1028 = vst [vmem:[%s1712_s8 + $0xc0] sm:$0xff] %v846_v36  ;;  %1060 = vst [vmem:[%s1712_s8 + $0x1c0] sm:$0xff] %v974_v37 }
 0x160   : > { %v848_v40 = vpop.f32.mrf.mxu0  ;;  %v976_v41 = vpop.f32.mrf.mxu1 }
 0x161   : > { %v849_v42 = vadd.f32 %v1708_v15, %v848_v40  ;;  %v977_v43 = vadd.f32 %v1708_v15, %v976_v41 }
 0x162   : > { %v850_v44 = vpop.f32.mrf.mxu0  ;;  %v978_v45 = vpop.f32.mrf.mxu1 }
 0x163   : > { %1029 = vst [vmem:[%s1712_s8 + $0xc8] sm:$0xff] %v849_v42  ;;  %1061 = vst [vmem:[%s1712_s8 + $0x1c8] sm:$0xff] %v977_v43 }
 0x164   : > { %v853_v46 = vpop.f32.mrf.mxu0  ;;  %v981_v47 = vpop.f32.mrf.mxu1 }
 0x165   : > { %v854_v48 = vadd.f32 %v1708_v15, %v853_v46  ;;  %v982_v49 = vadd.f32 %v1708_v15, %v981_v47 }
 0x166   : > { %v855_v50 = vpop.f32.mrf.mxu0  ;;  %v983_v51 = vpop.f32.mrf.mxu1 }
 0x167   : > { %1030 = vst [vmem:[%s1712_s8 + $0xd0] sm:$0xff] %v854_v48  ;;  %1062 = vst [vmem:[%s1712_s8 + $0x1d0] sm:$0xff] %v982_v49 }
 0x168   : > { %v856_v52 = vpop.f32.mrf.mxu0  ;;  %v984_v53 = vpop.f32.mrf.mxu1 }
 0x169   : > { %v857_v54 = vadd.f32 %v1708_v15, %v856_v52  ;;  %v985_v55 = vadd.f32 %v1708_v15, %v984_v53 }
 0x16a   : > { %v858_v56 = vpop.f32.mrf.mxu0  ;;  %v986_v57 = vpop.f32.mrf.mxu1 }
 0x16b   : > { %1031 = vst [vmem:[%s1712_s8 + $0xd8] sm:$0xff] %v857_v54  ;;  %1063 = vst [vmem:[%s1712_s8 + $0x1d8] sm:$0xff] %v985_v55 }
 0x16c   : > { %v861_v58 = vpop.f32.mrf.mxu0  ;;  %v989_v59 = vpop.f32.mrf.mxu1 }
 0x16d   : > { %v862_v60 = vadd.f32 %v1708_v15, %v861_v58  ;;  %v990_v61 = vadd.f32 %v1708_v15, %v989_v59 }
 0x16e   : > { %v863_v62 = vpop.f32.mrf.mxu0  ;;  %v991_v63 = vpop.f32.mrf.mxu1 }
 0x16f   : > { %1032 = vst [vmem:[%s1712_s8 + $0xe0] sm:$0xff] %v862_v60  ;;  %1064 = vst [vmem:[%s1712_s8 + $0x1e0] sm:$0xff] %v990_v61 }
 0x170   : > { %v864_v0 = vpop.f32.mrf.mxu0  ;;  %v992_v1 = vpop.f32.mrf.mxu1 }
 0x171   : > { %v865_v2 = vadd.f32 %v1708_v15, %v864_v0  ;;  %v993_v3 = vadd.f32 %v1708_v15, %v992_v1 }
 0x172   : > { %v866_v4 = vpop.f32.mrf.mxu0  ;;  %v994_v5 = vpop.f32.mrf.mxu1 }
 0x173   : > { %1033 = vst [vmem:[%s1712_s8 + $0xe8] sm:$0xff] %v865_v2  ;;  %1065 = vst [vmem:[%s1712_s8 + $0x1e8] sm:$0xff] %v993_v3 }
 0x174   : > { %v869_v6 = vpop.f32.mrf.mxu0  ;;  %v997_v7 = vpop.f32.mrf.mxu1 }
 0x175   : > { %v870_v8 = vadd.f32 %v1708_v15, %v869_v6  ;;  %v998_v9 = vadd.f32 %v1708_v15, %v997_v7 }
 0x176   : > { %v871_v10 = vpop.f32.mrf.mxu0  ;;  %v999_v11 = vpop.f32.mrf.mxu1 }
 0x177   : > { %1034 = vst [vmem:[%s1712_s8 + $0xf0] sm:$0xff] %v870_v8  ;;  %1066 = vst [vmem:[%s1712_s8 + $0x1f0] sm:$0xff] %v998_v9 }
 0x178   : > { %v872_v12 = vpop.f32.mrf.mxu0  ;;  %v1000_v13 = vpop.f32.mrf.mxu1 }
 0x179   : > { %v873_v14 = vadd.f32 %v1708_v15, %v872_v12  ;;  %v1001_v16 = vadd.f32 %v1708_v15, %v1000_v13 }
 0x17a   : > { %v874_v17 = vpop.f32.mrf.mxu0  ;;  %v1002_v18 = vpop.f32.mrf.mxu1 }
 0x17b   : > { %1035 = vst [vmem:[%s1712_s8 + $0xf8] sm:$0xff] %v873_v14  ;;  %1067 = vst [vmem:[%s1712_s8 + $0x1f8] sm:$0xff] %v1001_v16 }
 0x17c   : > { %1448 = shalt.err (!%p1445_p3)
}
 0x17d   : > { %s1449_s27 = scalar_lea.hbm %s1841_s19, 8192  ;;  %s1453_s30 = scalar_lea.hbm %s1894_s3, 131072 }
 0x17e   : > { %p1450_p4 = scmp.ne.s32.totalorder %s1841_s19, %s1449_s27  ;;  %p1454_p9 = scmp.lt.s32.totalorder %s1841_s19, %s1894_s3 }
 0x17f   : > { %p1455_p10 = scmp.lt.s32.totalorder %s1453_s30, %s1449_s27 }
 0x180   : > { %p1451_p7 = pnand %p1450_p4, %p1560_p5 }
 0x181   : > { %p1456_p11 = por %p1455_p10, %p1454_p9 }
 0x182   : > { %p1452_p8 = pneg %p1451_p7 }
 0x184   : > { %p1457_p12 = pnand %p1456_p11, %p1452_p8 }
 0x186   : > { %1460 = shalt.err (!%p1457_p12)
}
 0x187   : > { %s1500_s6 = smov 128   ;;  %s1501_s7 = smov 8  }
 0x188   : > { %1286 = dma.vmem_to_hbm [thread:$0]  (%p1560_p5), %s1843_s10, 8192, %s1841_s19, %s1851_s16, %s1500_s6, %s1500_s6, %s1501_s7  }
 0x189 PF: > { %p1292_p13 = scmp.ge.s32.totalorder %s1495_s15, 2  ;;  %s1097_s8 = sand.u32 1, %s1483_s12  }
 0x18a   : > { %s1098_s9 = scalar_lea.sflag [#allocation3], %s1097_s8 }
 0x18b   : > { %p1289_p0 = pnand %p1292_p13, %p1564_p6 }
 0x18d   : > { %p1290_p1 = pneg %p1289_p0 }
 0x18f   : > { %1478 = dma.done.wait (%p1290_p1), %s1098_s9, 8192  }
 0x190   : > { %1480 = vsyncadd (%p1290_p1), %s1098_s9, 4294959104  ;;  %p13_p2 = scmp.ge.s32.totalorder %s1547_s18, 18   ;;  %s1897_s12 = smov %s1487_s13 }
 0x191   : > { %s1898_s13 = smov %s1491_s14  ;;  %s1899_s14 = smov %s1558_s21 }
 0x192   : > { %s1900_s15 = smov %s1547_s18  ;;  %15 = sbr.rel (!%p13_p2) target bundleno = 3 (0x3), region = 67 }
 0x197   :  { %1103 = vsyncpa [#allocation3], 1 }
 0x198   :  { %1105 = vsyncpa [#allocation3 + $0x1], 1 }

</bundles_post_ra>
